<compile_context>
chip_gen: v7x
topology: tpu7x:2x2x1
jax: 0.10.0
libtpu: 0.0.40
codegen_flags: <defaults>
</compile_context>

<pallas_src>
import functools

import jax
import jax.numpy as jnp
from jax.experimental import pallas as pl
from jax.experimental.pallas import tpu as pltpu


# -------------------- Pallas kernels (the hot paths) --------------------

def _prefill_kernel(cache_hbm_ref, cur_ref, out_ref):
    # prev[:, :, :inp_seq_len, :].copy_(cur)
    # The cache is aliased to the output, so only the grid-covered tiles are written;
    # the rest of the cache stays untouched in HBM (zero extra traffic).  The aliased
    # cache input itself is never DMA'd (memory_space=ANY) -- it only establishes the alias.
    del cache_hbm_ref
    out_ref[...] = cur_ref[...]


def _decode_kernel(idx_ref, cache_ref, cur_ref, out_ref):
    # prev.index_copy_(dim=2, idx - 1, cur) for a single new token.
    # Only the one small seq tile containing the target row is DMA'd (the BlockSpec
    # index_map uses the scalar-prefetched idx); within that tiny tile the target row
    # is replaced with cur via a sublane select.  Cost is O(B*H*TILE*D), not O(cache).
    tile_s = out_ref.shape[2]
    # Clamp: PyTorch index_copy_ would raise on idx == 0; avoid OOB tile math here.
    pos = jnp.maximum(idx_ref[0] - 1, 0)
    off = pos % tile_s
    row_ids = jax.lax.broadcasted_iota(jnp.int32, out_ref.shape, dimension=2)
    out_ref[...] = jnp.where(row_ids == off, cur_ref[...], cache_ref[...])


# -------------------- pallas_call wrappers --------------------

def _compiler_params(dim_sem, block_bytes):
    # Explicit VMEM budget: double-buffered in + out blocks plus slack, capped for v7x.
    vmem = int(min(48 * 1024 * 1024, max(8 * 1024 * 1024, 6 * block_bytes)))
    return pltpu.CompilerParams(dimension_semantics=dim_sem, vmem_limit_bytes=vmem)


def _pick_prefill_tile(L, H, D, itemsize, max_block_bytes=2 * 1024 * 1024):
    """Largest multiple-of-8 seq tile dividing L whose block fits the VMEM budget."""
    candidates = [t for t in (1024, 512, 256, 128, 64, 32, 16, 8) if L % t == 0]
    if not candidates:
        return None
    for t in candidates:
        if H * t * D * itemsize <= max_block_bytes:
            return t
    return candidates[-1]


@functools.partial(jax.jit, donate_argnums=(0,))
def _prefill_update(cache, cur):
    """prev[:, :, :L, :] = cur, in place on the (donated) cache."""
    B, H, S, D = cache.shape
    L = cur.shape[2]
    itemsize = jnp.dtype(cache.dtype).itemsize
    tile_s = _pick_prefill_tile(L, H, D, itemsize)
    if tile_s is None:
        # TODO(synk): ragged prefill length (L % 8 != 0) has no clean tiled Pallas
        # block; fall back to XLA dynamic_update_slice (still in-place via donation).
        return jax.lax.dynamic_update_slice(cache, cur, (0, 0, 0, 0))

    block = (1, H, tile_s, D)
    block_bytes = H * tile_s * D * itemsize
    grid = (B, L // tile_s)
    return pl.pallas_call(
        _prefill_kernel,
        out_shape=jax.ShapeDtypeStruct(cache.shape, cache.dtype),
        grid_spec=pltpu.PrefetchScalarGridSpec(
            num_scalar_prefetch=0,
            grid=grid,
            in_specs=[
                pl.BlockSpec(memory_space=pl.ANY),                 # aliased cache (no DMA)
                pl.BlockSpec(block, lambda b, s: (b, 0, s, 0)),    # cur tile
            ],
            out_specs=pl.BlockSpec(block, lambda b, s: (b, 0, s, 0)),
        ),
        input_output_aliases={0: 0},  # cache -> output: in-place cache update
        compiler_params=_compiler_params(("parallel", "parallel"), block_bytes),
    )(cache, cur)


@functools.partial(jax.jit, donate_argnums=(0,))
def _decode_update(cache, cur, idx):
    """prev.index_copy_(2, idx - 1, cur), in place on the (donated) cache."""
    B, H, S, D = cache.shape
    itemsize = jnp.dtype(cache.dtype).itemsize
    # Smallest legal seq tile (keeps sublane-dense stores); fall back to full S if ragged.
    packing = max(1, 4 // itemsize)
    if S % (8 * packing) == 0:
        tile_s = 8 * packing
    elif S % 8 == 0:
        tile_s = 8
    else:
        tile_s = S
    block = (1, H, tile_s, D)
    block_bytes = H * tile_s * D * itemsize
    idx32 = idx.reshape(-1)[:1].astype(jnp.int32)

    def cache_map(b, idx_ref):
        # Only the seq tile containing the new token is touched.
        return (b, 0, jnp.maximum(idx_ref[0] - 1, 0) // tile_s, 0)

    return pl.pallas_call(
        _decode_kernel,
        out_shape=jax.ShapeDtypeStruct(cache.shape, cache.dtype),
        grid_spec=pltpu.PrefetchScalarGridSpec(
            num_scalar_prefetch=1,
            grid=(B,),
            in_specs=[
                pl.BlockSpec(block, cache_map),                              # cache tile
                pl.BlockSpec((1, H, 1, D), lambda b, idx_ref: (b, 0, 0, 0)),  # new token
            ],
            out_specs=pl.BlockSpec(block, cache_map),
        ),
        # args are (idx, cache, cur): scalar-prefetch operands count, so cache is index 1.
        input_output_aliases={1: 0},
        compiler_params=_compiler_params(("parallel",), block_bytes),
    )(idx32, cache, cur)


# -------------------- Module-equivalent wrapper --------------------

class KVCache:
    """JAX/Pallas port of optimum.habana ... glm4v.modeling_chatglm.KVCache.

    Note: the prefill/decode update paths *consume* (donate) the previous cache
    buffer; external callers must not keep using the pre-update `prev` array.
    """

    def __init__(self):
        self.cache = None
        self.inp_seq_len = -1

    def allocate(self, inp_seq_len, dtype, shape):
        if self.cache is None or self.cache.shape != shape:
            self.inp_seq_len = inp_seq_len
            self.cache = jnp.zeros(shape, dtype=dtype)
        else:
            assert self.inp_seq_len == inp_seq_len, (
                f"inp_seq_len must be the same. self.inp_seq_len:{self.inp_seq_len} "
                f"inp_seq_len:{inp_seq_len}"
            )
            self.cache = jnp.zeros(shape, dtype=dtype)

    def get_shape(self):
        if self.cache is None:
            return None
        return self.cache.shape

    def update(self, prev, cur, dim, idx, inp_seq_len):
        orig_cur = cur
        if prev.shape == cur.shape:
            # prev.copy_(cur): functionally the new cache just aliases cur (zero traffic).
            assert cur.dtype == prev.dtype, "cur/prev dtypes must match"
            self.cache = cur
            return orig_cur
        if cur.shape[2] > 1 and cur.shape[2] <= prev.shape[2]:
            assert dim == 2, "KVCache layout assumes seq axis is dim=2"
            assert cur.shape[2] == inp_seq_len, "prefill length must equal inp_seq_len"
            assert cur.dtype == prev.dtype, "cur/prev dtypes must match"
            assert (cur.shape[0], cur.shape[1], cur.shape[3]) == (
                prev.shape[0], prev.shape[1], prev.shape[3]), "non-seq dims must match"
            self.cache = _prefill_update(prev, cur)      # prev[:, :, :L, :].copy_(cur)
            return orig_cur
        assert cur.shape[2] == 1, (
            f"Cannot update kv-cache. Unsupported shapes. prev:{prev.shape} cur:{cur.shape}"
        )
        if idx is not None:
            assert dim == 2, "KVCache layout assumes seq axis is dim=2"
            assert cur.dtype == prev.dtype, "cur/prev dtypes must match"
            self.cache = _decode_update(prev, cur, jnp.asarray(idx))  # index_copy_(2, idx-1, cur)
            return self.cache
        else:
            # torch.cat fallback (shape-changing, no hot compute): plain JAX glue.
            return jnp.concatenate((prev, cur), axis=dim)

    def forward(self, cur, dim, idx):
        return self.update(self.cache, cur, dim, idx, self.inp_seq_len)

    __call__ = forward


# -------------------- Demo / correctness check --------------------

if __name__ == "__main__":
    key = jax.random.PRNGKey(0)
    B, H, S, D = 2, 4, 16, 32
    inp_seq_len = 8
    dtype = jnp.float32

    kv = KVCache()
    kv.allocate(inp_seq_len, dtype, shape=(B, H, S, D))

    k1, k2, k3 = jax.random.split(key, 3)

    # 1) Prefill: write inp_seq_len tokens into the front of the cache.
    cur_prefill = jax.random.normal(k1, (B, H, inp_seq_len, D), dtype=dtype)
    out_prefill = kv(cur_prefill, dim=2, idx=None)
    jax.block_until_ready(out_prefill)
    jax.block_until_ready(kv.cache)

    ref_cache = jnp.zeros((B, H, S, D), dtype).at[:, :, :inp_seq_len, :].set(cur_prefill)
    assert jnp.allclose(kv.cache, ref_cache), "prefill cache mismatch"
    assert jnp.allclose(out_prefill, cur_prefill), "prefill must return orig_cur"

    # 2) Decode: index_copy a single new token at position idx-1.
    cur_decode = jax.random.normal(k2, (B, H, 1, D), dtype=dtype)
    idx = jnp.array([inp_seq_len + 1], dtype=jnp.int32)  # writes seq row inp_seq_len
    out_decode = kv(cur_decode, dim=2, idx=idx)
    jax.block_until_ready(out_decode)

    ref_cache = ref_cache.at[:, :, inp_seq_len:inp_seq_len + 1, :].set(cur_decode)
    assert jnp.allclose(out_decode, ref_cache), "decode cache mismatch"
    assert jnp.allclose(kv.cache, ref_cache), "decode must update stored cache"

    # 3) Full-shape copy path (prev.shape == cur.shape): pure alias, no kernel.
    cur_full = jax.random.normal(k3, (B, H, S, D), dtype=dtype)
    out_full = kv(cur_full, dim=2, idx=None)
    jax.block_until_ready(out_full)
    assert jnp.allclose(out_full, cur_full), "full-copy must return orig_cur"
    assert jnp.allclose(kv.cache, cur_full), "full-copy cache mismatch"

    print("KERNEL_OK")
</pallas_src>

<mosaic_0001>
module attributes {stable_mosaic.version = 11 : i64} {
  func.func @_prefill_kernel(%arg0: i32, %arg1: i32, %arg2: memref<2x4x16x32xf32, #tpu.memory_space<any>>, %arg3: memref<1x4x8x32xf32, #tpu.memory_space<vmem>>, %arg4: memref<1x4x8x32xf32, #tpu.memory_space<vmem>>) attributes {dimension_semantics = [#tpu.dimension_semantics<parallel>, #tpu.dimension_semantics<parallel>], iteration_bounds = array<i64: 2, 1>, scalar_prefetch = 0 : i64, scratch_operands = 0 : i64, tpu.core_type = #tpu.core_type<tc>, window_params = [{}, {transform_indices = @transform_1, window_bounds = array<i64: 1, 4, 8, 32>}, {transform_indices = @transform_2, window_bounds = array<i64: 1, 4, 8, 32>}]} {
    %c0 = arith.constant 0 : index
    %c0_0 = arith.constant 0 : index
    %c0_1 = arith.constant 0 : index
    %c0_2 = arith.constant 0 : index
    %0 = vector.load %arg3[%c0, %c0_0, %c0_1, %c0_2] : memref<1x4x8x32xf32, #tpu.memory_space<vmem>>, vector<1x4x8x32xf32>
    %c0_3 = arith.constant 0 : index
    %c0_4 = arith.constant 0 : index
    %c0_5 = arith.constant 0 : index
    %c0_6 = arith.constant 0 : index
    %1 = vector.load %arg4[%c0_3, %c0_4, %c0_5, %c0_6] : memref<1x4x8x32xf32, #tpu.memory_space<vmem>>, vector<1x4x8x32xf32>
    tpu.vector_store %arg4[%c0_3, %c0_4, %c0_5, %c0_6], %0 {strides = array<i32>} : memref<1x4x8x32xf32, #tpu.memory_space<vmem>>, vector<1x4x8x32xf32>,
    return
  }
  func.func @transform_1(%arg0: i32, %arg1: i32) -> (i32, i32, i32, i32) {
    %c0_i32 = arith.constant 0 : i32
    %c0_i32_0 = arith.constant 0 : i32
    %c0_i32_1 = arith.constant 0 : i32
    return %arg0, %c0_i32, %arg1, %c0_i32_0 : i32, i32, i32, i32
  }
  func.func @transform_2(%arg0: i32, %arg1: i32) -> (i32, i32, i32, i32) {
    %c0_i32 = arith.constant 0 : i32
    %c0_i32_0 = arith.constant 0 : i32
    %c0_i32_1 = arith.constant 0 : i32
    return %arg0, %c0_i32, %arg1, %c0_i32_0 : i32, i32, i32, i32
  }
}

</mosaic_0001>

<bundles_post_ra>
// kernel: _prefill_update.1
= control target key start
LH: loop header
LB: loop body
LE: loop exit
PB: predicated region body
PF: predicated region fallthrough
CT: control target
= control target key end

     0   :  { %7 = vsyncpa [#allocation3], 0  ;;  %s657_s0 = inlined_call_operand.hbm [shape: f32[2,4,16,32], index: 0, kind: input, shape index: {}, may-alias: {0,2}]   ;;  %s658_s1 = inlined_call_operand.hbm [shape: f32[2,4,8,32], index: 1, kind: input, shape index: {}]   ;;  %s659_s2 = inlined_call_operand.hbm [shape: f32[2,4,16,32], index: 2, kind: output, shape index: {}, may-alias: {0,2}]  }
   0x1   :  { %9 = vsyncpa [#allocation3 + $0x1], 0 }
   0x2   :  { %10 = vsyncpa [#allocation4], 0 }
   0x3   :  { %12 = vsyncpa [#allocation4 + $0x1], 0  ;;  %s482_s9 = smov 0   ;;  %s484_s10 = smov 0  }
   0x4   :  { %s486_s11 = smov 0   ;;  %s488_s12 = smov 0  }
   0x5   :  { %s490_s13 = smov 0   ;;  %s492_s0 = smov 0  }
   0x6 LB: > { %s262_s14 = sadd.s32 4294967295, %s458_s0   ;;  %s263_s15 = sadd.s32 4294967294, %s458_s0   ;;  %s458_s0 = sphi %s492_s0, %s18_s0   ;;  %s454_s13 = sphi %s490_s13, %s674_s13   ;;  %s450_s12 = sphi %s488_s12, %s673_s12   ;;  %s446_s11 = sphi %s486_s11, %s672_s11   ;;  %s442_s10 = sphi %s484_s10, %s671_s10   ;;  %s438_s9 = sphi %s482_s9, %s670_s9  }
   0x7   : > { %s30_s16 = sadd.s32 1, %s454_s13  ;;  %s39_s17 = sadd.s32 1, %s446_s11 }
   0x8   : > { %p32_p0 = scmp.ge.s32.totalorder %s30_s16, 2  ;;  %p46_p1 = scmp.ne.s32.totalorder %s446_s11, %s442_s10 }
   0x9   : > { %p47_p2 = scmp.eq.s32.totalorder %s458_s0, 0  ;;  %p52_p3 = scmp.ne.s32.totalorder %s442_s10, %s438_s9 }
   0xa   : > { %s676_s16 = smov (%p32_p0, %s30_s16), 0  ;;  %p53_p5 = scmp.eq.s32.totalorder %s262_s14, 0 }
   0xb   : > { %p523_p4 = por %p47_p2, %p46_p1  ;;  %s34_s19 = ssub.s32 %s454_s13, %s676_s16 }
   0xc   : > { %p78_p6 = scmp.eq.s32.totalorder %s262_s14, 1  ;;  %p37_p7 = scmp.eq.s32.totalorder %s34_s19, 0 }
   0xd   : > { %p529_p8 = por %p53_p5, %p52_p3  ;;  %p84_p10 = scmp.eq.s32.totalorder %s263_s15, 1 }
   0xe   : > { %p533_p9 = por %p78_p6, %p46_p1  ;;  %p291_p13 = scmp.lt.s32.totalorder %s458_s0, 2 }
   0xf   : > { %s538_s22 = scalar_select %p37_p7, %s446_s11, %s39_s17  }
  0x10   : > { %s663_s21 = scalar_select %p533_p9, 1, 0 }
  0x11   : > { %p540_p11 = por %p84_p10, %p52_p3  ;;  %s104_s24 = sand.u32 1, %s446_s11  }
  0x12   : > { %s266_s25 = sshll.u32 %s104_s24, 5  ;;  %s277_s26 = sshll.u32 %s454_s13, 9 }
  0x13   : > { %s664_s23 = scalar_select %p540_p11, 1, 0 }
  0x14   : > { %s551_s29 = scalar_lea.hbm %s658_s1, %s277_s26  ;;  %s108_s30 = scalar_lea.vmem [#allocation2], %s266_s25 }
  0x15   : > { %s116_s3 = sshll.u32 %s108_s30, 4  ;;  %p557_p0 = pnand %p291_p13, %p523_p4  ;;  %s553_s3 = int_to_ptr.vmem [resolvable:$true] %s116_s3 }
  0x16   : > { %s562_s5 = scalar_lea.sflag [#allocation3], %s104_s24  ;;  %s346_s6 = scalar_lea.hbm %s551_s29, 512 }
  0x17   : > { %p347_p2 = scmp.ne.s32.totalorder %s551_s29, %s346_s6  ;;  %p348_p3 = pneg %p557_p0 }
  0x18   : > { %s351_s14 = scalar_lea.hbm %s658_s1, 1024  ;;  %p352_p4 = scmp.lt.u32.totalorder %s551_s29, %s658_s1 }
  0x19   : > { %p349_p5 = pnand %p348_p3, %p347_p2  ;;  %p353_p7 = scmp.lt.u32.totalorder %s351_s14, %s346_s6 }
  0x1a   : > { %p355_p13 = scmp.lt.u32.totalorder %s346_s6, %s551_s29 }
  0x1b   : > { %p350_p6 = pneg %p349_p5  ;;  %p354_p10 = por %p353_p7, %p352_p4 }
  0x1d   : > { %p356_p12 = por %p355_p13, %p354_p10 }
  0x1f   : > { %p357_p1 = pnand %p356_p12, %p350_p6 }
  0x21   : > { %360 = shalt.err (!%p357_p1)
}
  0x22   : > { %s361_s18 = scalar_lea.vmem %s553_s3, 512  ;;  %s460_s19 = smov [#allocation2]  }
  0x23   : > { %p362_p2 = scmp.ne.s32.totalorder %s553_s3, %s361_s18  ;;  %s366_s24 = sshll.u32 %s460_s19, 4  ;;  %s367_s24 = int_to_ptr.vmem [resolvable:$false] %s366_s24 }
  0x24   : > { %s368_s25 = scalar_lea.vmem %s367_s24, 1024  ;;  %p369_p9 = scmp.lt.s32.totalorder %s553_s3, %s367_s24 }
  0x25   : > { %p364_p5 = pnand %p362_p2, %p348_p3  ;;  %p370_p4 = scmp.lt.s32.totalorder %s368_s25, %s361_s18 }
  0x27   : > { %p365_p11 = pneg %p364_p5  ;;  %p371_p7 = por %p370_p4, %p369_p9 }
  0x29   : > { %p372_p10 = pnand %p371_p7, %p365_p11 }
  0x2b   : > { %375 = shalt.err (!%p372_p10)
}
  0x2c   : > { %s461_s26 = smov 128   ;;  %s462_s27 = smov 8  }
  0x2d   : > { %286 = dma.hbm_to_vmem [thread:$0]  (!%p557_p0), %s551_s29, 512, %s553_s3, %s562_s5, %s461_s26, %s461_s26, %s462_s27  }
  0x2e   : > { %p124_p12 = scmp.lt.s32.totalorder %s458_s0, 3  ;;  %p666_p1 = scmp.ge.s32.totalorder %s458_s0, 1 }
  0x30   : > { %p125_p3 = pnand %p666_p1, %p124_p12 }
  0x31   : > { %s594_s28 = sand.u32 (!%p125_p3), 1, %s442_s10  }
  0x32   : > { %128 = sbr.rel (%p125_p3) target bundleno = 86 (0x56), region = 24  ;;  %s270_s30 = sshll.u32 (!%p125_p3), %s594_s28, 5 }
  0x33   : > { %s131_s6 = scalar_lea.sflag (!%p125_p3), [#allocation3], %s594_s28  ;;  %s134_s7 = scalar_lea.vmem (!%p125_p3), [#allocation2], %s270_s30 }
  0x39   : > { %429 = dma.done.wait (%p529_p8), %s131_s6, 512  }
  0x3a   : > { %431 = vsyncadd (%p529_p8), %s131_s6, 4294966784  ;;  %s152_s29 = scalar_lea.vmem [#allocation5], %s270_s30  ;;  %s278_s4 = sshll.u32 %s450_s12, 10  ;;  %vm157_vm0 = vcmask 261120   ;;  %v153_v0 = vld [vmem:[%s134_s7] sm:$0xff]  ;;  %v154_v1 = vld [vmem:[%s134_s7 + $0x8] sm:$0xff] }
  0x3b   : > { %s177_s3 = sshll.u32 %s152_s29, 4  ;;  %s608_s14 = scalar_lea.hbm %s659_s2, %s278_s4  ;;  %v155_v2 = vld [vmem:[%s134_s7 + $0x10] sm:$0xff]  ;;  %158 = vst.msk [vmem:[%s152_s29] sm:$0xff] %vm157_vm0, %v153_v0  ;;  %159 = vst.msk [vmem:[%s152_s29 + $0x8] sm:$0xff] %vm157_vm0, %v154_v1  ;;  %v156_v3 = vld [vmem:[%s134_s7 + $0x18] sm:$0xff]  ;;  %s603_s3 = int_to_ptr.vmem [resolvable:$true] %s177_s3 }
  0x3c   : > { %160 = vst.msk [vmem:[%s152_s29 + $0x10] sm:$0xff] %vm157_vm0, %v155_v2  ;;  %161 = vst.msk [vmem:[%s152_s29 + $0x18] sm:$0xff] %vm157_vm0, %v156_v3  ;;  %s163_s12 = scalar_lea.sflag [#allocation4], %s594_s28  ;;  %s376_s20 = scalar_lea.vmem %s603_s3, 512 }
  0x3d   : > { %p377_p8 = scmp.ne.s32.totalorder %s603_s3, %s376_s20  ;;  %p667_p9 = scmp.ne.s32.totalorder %s663_s21, 0 }
  0x3e   : > { %s463_s15 = smov [#allocation5]  }
  0x3f   : > { %p378_p11 = pnand %p377_p8, %p667_p9  ;;  %s380_s17 = sshll.u32 %s463_s15, 4  ;;  %s381_s17 = int_to_ptr.vmem [resolvable:$false] %s380_s17 }
  0x40   : > { %s382_s18 = scalar_lea.vmem %s381_s17, 1024  ;;  %p383_p6 = scmp.lt.s32.totalorder %s603_s3, %s381_s17 }
  0x41   : > { %p379_p0 = pneg %p378_p11  ;;  %p384_p13 = scmp.lt.s32.totalorder %s382_s18, %s376_s20 }
  0x43   : > { %p385_p2 = por %p384_p13, %p383_p6 }
  0x45   : > { %p386_p5 = pnand %p385_p2, %p379_p0 }
  0x47   : > { %389 = shalt.err (!%p386_p5)
}
  0x48   : > { %s390_s19 = scalar_lea.hbm %s608_s14, 512  ;;  %s394_s26 = scalar_lea.hbm %s659_s2, 2048 }
  0x49   : > { %p391_p4 = scmp.ne.s32.totalorder %s608_s14, %s390_s19  ;;  %p395_p12 = scmp.lt.u32.totalorder %s608_s14, %s659_s2 }
  0x4a   : > { %p396_p1 = scmp.lt.u32.totalorder %s394_s26, %s390_s19  ;;  %p398_p8 = scmp.lt.u32.totalorder %s390_s19, %s608_s14 }
  0x4b   : > { %p392_p7 = pnand %p391_p4, %p667_p9 }
  0x4c   : > { %p397_p3 = por %p396_p1, %p395_p12 }
  0x4d   : > { %p393_p10 = pneg %p392_p7 }
  0x4e   : > { %p399_p11 = por %p398_p8, %p397_p3 }
  0x50   : > { %p400_p0 = pnand %p399_p11, %p393_p10 }
  0x52   : > { %403 = shalt.err (!%p400_p0)
}
  0x53   : > { %s464_s6 = smov 128   ;;  %s465_s7 = smov 256  }
  0x54   : > { %s466_s29 = smov 8  }
  0x55   : > { %281 = dma.vmem_to_hbm [thread:$0]  (%p667_p9), %s603_s3, 512, %s608_s14, %s163_s12, %s464_s6, %s465_s7, %s466_s29  }
  0x56 PF: > { %s192_s4 = sand.u32 1, %s438_s9   ;;  %p668_p6 = scmp.ne.s32.totalorder %s664_s23, 0 }
  0x57   : > { %p669_p13 = scmp.ge.s32.totalorder %s458_s0, 2  ;;  %s193_s5 = scalar_lea.sflag [#allocation4], %s192_s4 }
  0x59   : > { %p288_p2 = pnand %p669_p13, %p668_p6 }
  0x5b   : > { %433 = dma.done.wait (!%p288_p2), %s193_s5, 512  }
  0x5c   : > { %435 = vsyncadd (!%p288_p2), %s193_s5, 4294966784  ;;  %s18_s0 = sadd.s32 1, %s458_s0   ;;  %s670_s9 = smov %s442_s10 }
  0x5d   : > { %p15_p5 = scmp.ge.s32.totalorder %s18_s0, 4   ;;  %s671_s10 = smov %s446_s11 }
  0x5e   : > { %s672_s11 = smov %s538_s22  ;;  %s673_s12 = smov %s454_s13 }
  0x5f   : > { %s674_s13 = smov %s676_s16  ;;  %17 = sbr.rel (!%p15_p5) target bundleno = 6 (0x6), region = 69 }
  0x66   :  { %198 = vsyncpa [#allocation3], 1 }
  0x67   :  { %200 = vsyncpa [#allocation3 + $0x1], 1 }
  0x68   :  { %201 = vsyncpa [#allocation4], 1 }
  0x69   :  { %203 = vsyncpa [#allocation4 + $0x1], 1 }

</bundles_post_ra>
